<compile_context>
chip_gen: v6e
topology: v6e:2x2x1
jax: 0.10.0
libtpu: 0.0.40
codegen_flags: <defaults>
</compile_context>

<pallas_src>
import functools

import jax
import jax.numpy as jnp
from jax.experimental import pallas as pl
from jax.experimental.pallas import tpu as pltpu


def _gap_kernel_single(x_ref, o_ref, *, inv_hw):
    # Whole reduction axis in one block: reduce and store, no accumulator needed.
    s = jnp.sum(x_ref[...], axis=-1, dtype=jnp.float32)
    o_ref[...] = (s * inv_hw).astype(o_ref.dtype)


def _gap_kernel_acc(x_ref, o_ref, acc_ref, *, inv_hw, hw_total, hw_tile, needs_mask):
    # x_ref: (n_tile, c_tile, hw_tile); o_ref/acc_ref: (n_tile, c_tile).
    k = pl.program_id(2)
    last = pl.num_programs(2) - 1

    @pl.when(k == 0)
    def _():
        acc_ref[...] = jnp.zeros_like(acc_ref)

    if needs_mask:
        # Only the final HW tile is partial; full tiles take the unmasked path.
        @pl.when(k < last)
        def _():
            acc_ref[...] += jnp.sum(x_ref[...], axis=-1, dtype=jnp.float32)

        @pl.when(k == last)
        def _():
            lane = jax.lax.broadcasted_iota(jnp.int32, (1, 1, hw_tile), 2)
            valid = lane < (hw_total - k * hw_tile)
            x = jnp.where(valid, x_ref[...], 0)
            acc_ref[...] += jnp.sum(x, axis=-1, dtype=jnp.float32)
    else:
        acc_ref[...] += jnp.sum(x_ref[...], axis=-1, dtype=jnp.float32)

    @pl.when(k == last)
    def _():
        o_ref[...] = (acc_ref[...] * inv_hw).astype(o_ref.dtype)


def _pick_tiles(N, C, HW, itemsize, target_bytes):
    """Choose (n_tile, c_tile, hw_tile) so one input tile is ~target_bytes.

    Constraints honored:
      * input block (n_tile, c_tile, hw_tile): c_tile % 8 == 0 or c_tile == C;
        hw_tile % 128 == 0 or hw_tile == HW.
      * output block (n_tile, c_tile): n_tile == N or n_tile % 8 == 0 (n_tile<=8 so
        it equals N or is 8); c_tile % 128 == 0 or c_tile == C.
    """
    n_tile = N if N <= 8 else 8
    max_elems = max(1, target_bytes // itemsize)

    # Whole (n_tile, C, HW) slab fits -> single block over C and HW.
    if n_tile * C * HW <= max_elems:
        return n_tile, C, HW

    # Prefer tiling channels only, keeping the full lane-dense H*W axis per block.
    c_fit = max_elems // (n_tile * HW)
    if c_fit >= C:
        return n_tile, C, HW
    if c_fit >= 128:
        return n_tile, (c_fit // 128) * 128, HW  # lane-aligned output block

    # H*W too large even for a thin channel slab: also tile the reduction axis.
    c_tile = C if C <= 128 else 128
    hw_budget = max(128, max_elems // (n_tile * c_tile))

    # Largest 128-aligned exact divisor of HW within budget (no tail masking needed).
    hw_tile = 0
    d = 128
    while d <= hw_budget:
        if HW % d == 0:
            hw_tile = d
        d += 128
    if hw_tile == 0:
        # No lane-aligned exact divisor: 128-multiple tile, tail masked in-kernel.
        hw_tile = min(max(128, (hw_budget // 128) * 128), pl.cdiv(HW, 128) * 128)
    return n_tile, c_tile, hw_tile


def global_avg_pool_2d(x, *, target_bytes=2 * 1024 * 1024):
    """Pallas GlobalAvgPool2d: (N, C, H, W) -> (N, C), mean over flattened H*W."""
    N, C, H, W = x.shape
    HW = H * W
    # Lane-dense layout: reduction axis maps to the 128-wide lane dimension.
    x3 = x.reshape(N, C, HW)

    n_tile, c_tile, hw_tile = _pick_tiles(N, C, HW, jnp.dtype(x.dtype).itemsize,
                                          target_bytes)
    grid_n = pl.cdiv(N, n_tile)
    grid_c = pl.cdiv(C, c_tile)
    grid_k = pl.cdiv(HW, hw_tile)
    inv_hw = float(1.0 / HW)

    if grid_k == 1:
        # Single block along H*W: no accumulator, purely parallel 2-D grid.
        kernel = functools.partial(_gap_kernel_single, inv_hw=inv_hw)
        return pl.pallas_call(
            kernel,
            out_shape=jax.ShapeDtypeStruct((N, C), x.dtype),
            grid_spec=pltpu.PrefetchScalarGridSpec(
                num_scalar_prefetch=0,
                grid=(grid_n, grid_c),
                in_specs=[
                    pl.BlockSpec((n_tile, c_tile, HW), lambda n, c: (n, c, 0)),
                ],
                out_specs=pl.BlockSpec((n_tile, c_tile), lambda n, c: (n, c)),
            ),
            compiler_params=pltpu.CompilerParams(
                dimension_semantics=("parallel", "parallel"),
            ),
        )(x3)

    needs_mask = (HW % hw_tile) != 0
    kernel = functools.partial(
        _gap_kernel_acc,
        inv_hw=inv_hw,
        hw_total=HW,
        hw_tile=hw_tile,
        needs_mask=needs_mask,
    )
    return pl.pallas_call(
        kernel,
        out_shape=jax.ShapeDtypeStruct((N, C), x.dtype),
        grid_spec=pltpu.PrefetchScalarGridSpec(
            num_scalar_prefetch=0,
            grid=(grid_n, grid_c, grid_k),
            in_specs=[
                pl.BlockSpec((n_tile, c_tile, hw_tile), lambda n, c, k: (n, c, k)),
            ],
            out_specs=pl.BlockSpec((n_tile, c_tile), lambda n, c, k: (n, c)),
            scratch_shapes=[pltpu.VMEM((n_tile, c_tile), jnp.float32)],
        ),
        compiler_params=pltpu.CompilerParams(
            # Batch/channel tiles are independent; the H*W reduction axis is last.
            dimension_semantics=("parallel", "parallel", "arbitrary"),
        ),
    )(x3)


def _ref(x):
    return jnp.mean(x.reshape(x.shape[0], x.shape[1], -1), axis=2)


if __name__ == "__main__":
    key = jax.random.PRNGKey(0)

    # Small shape matching the module's typical use (N, C, H, W): single-block path.
    x = jax.random.normal(key, (2, 4, 16, 16), dtype=jnp.float32)
    out = jax.block_until_ready(global_avg_pool_2d(x))
    assert out.shape == (2, 4)
    assert jnp.allclose(out, _ref(x), atol=1e-5, rtol=1e-5)

    # Exercises the C-tiling + HW-accumulator path (partial C edge tile).
    x2 = jax.random.normal(jax.random.PRNGKey(1), (8, 200, 32, 32), dtype=jnp.float32)
    out2 = jax.block_until_ready(global_avg_pool_2d(x2))
    assert out2.shape == (8, 200)
    assert jnp.allclose(out2, _ref(x2), atol=1e-5, rtol=1e-5)

    # Exercises the masked partial HW tail tile (tiny VMEM budget forces tiling of a
    # non-128-divisible H*W axis).
    x3 = jax.random.normal(jax.random.PRNGKey(2), (2, 16, 20, 20), dtype=jnp.float32)
    out3 = jax.block_until_ready(global_avg_pool_2d(x3, target_bytes=8192))
    assert out3.shape == (2, 16)
    assert jnp.allclose(out3, _ref(x3), atol=1e-5, rtol=1e-5)

    print("KERNEL_OK")
</pallas_src>

<mosaic_0001>
module attributes {stable_mosaic.version = 11 : i64} {
  func.func @_gap_kernel_single(%arg0: i32, %arg1: i32, %arg2: memref<2x4x256xf32, #tpu.memory_space<vmem>>, %arg3: memref<2x4xf32, #tpu.memory_space<vmem>>) attributes {dimension_semantics = [#tpu.dimension_semantics<parallel>, #tpu.dimension_semantics<parallel>], iteration_bounds = array<i64: 1, 1>, scalar_prefetch = 0 : i64, scratch_operands = 0 : i64, tpu.core_type = #tpu.core_type<tc>, window_params = [{transform_indices = @transform_0, window_bounds = array<i64: 2, 4, 256>}, {transform_indices = @transform_1, window_bounds = array<i64: 2, 4>}]} {
    %c0 = arith.constant 0 : index
    %c0_0 = arith.constant 0 : index
    %c0_1 = arith.constant 0 : index
    %0 = vector.load %arg2[%c0, %c0_0, %c0_1] : memref<2x4x256xf32, #tpu.memory_space<vmem>>, vector<2x4x256xf32>
    %cst = arith.constant dense<0.000000e+00> : vector<2x4xf32>
    %1 = vector.multi_reduction <add>, %0, %cst [2] : vector<2x4x256xf32> to vector<2x4xf32>
    %cst_2 = arith.constant 3.906250e-03 : f32
    %2 = vector.broadcast %cst_2 : f32 to vector<2x4xf32>
    %3 = arith.mulf %1, %2 : vector<2x4xf32>
    %c0_3 = arith.constant 0 : index
    %c0_4 = arith.constant 0 : index
    %4 = vector.load %arg3[%c0_3, %c0_4] : memref<2x4xf32, #tpu.memory_space<vmem>>, vector<2x4xf32>
    tpu.vector_store %arg3[%c0_3, %c0_4], %3 {strides = array<i32>} : memref<2x4xf32, #tpu.memory_space<vmem>>, vector<2x4xf32>,
    return
  }
  func.func @transform_0(%arg0: i32, %arg1: i32) -> (i32, i32, i32) {
    %c0_i32 = arith.constant 0 : i32
    %c0_i32_0 = arith.constant 0 : i32
    return %arg0, %arg1, %c0_i32 : i32, i32, i32
  }
  func.func @transform_1(%arg0: i32, %arg1: i32) -> (i32, i32) {
    %c0_i32 = arith.constant 0 : i32
    return %arg0, %arg1 : i32, i32
  }
}

</mosaic_0001>

<bundles_post_ra>
// kernel: tpu_custom_call.1
= control target key start
LH: loop header
LB: loop body
LE: loop exit
PB: predicated region body
PF: predicated region fallthrough
CT: control target
= control target key end

     0   :  { %6 = vsyncpa [#allocation3], 0  ;;  %s146_s0 = inlined_call_operand.hbm [shape: f32[2,4,256], index: 0, kind: input, shape index: {}]   ;;  %s147_s1 = inlined_call_operand.hbm [shape: f32[2,4], index: 1, kind: output, shape index: {}]  }
   0x1   :  { %7 = vsyncpa [#allocation4], 0  ;;  %s126_s6 = smov [#allocation2]  }
   0x2   :  { %s13_s7 = sshll.u32 %s126_s6, 4  ;;  %s14_s7 = int_to_ptr.vmem [resolvable:$true] %s13_s7 }
   0x3   :  { %s90_s8 = scalar_lea.vmem %s14_s7, 256  ;;  %p95_p1 = scmp.lt.s32.totalorder %s14_s7, %s14_s7 }
   0x4   :  { %p91_p0 = scmp.ne.s32.totalorder %s14_s7, %s90_s8  ;;  %p96_p2 = scmp.lt.s32.totalorder %s90_s8, %s90_s8 }
   0x6   :  { %p97_p3 = por %p96_p2, %p95_p1 }
   0x8   :  { %p98_p4 = pnand %p97_p3, %p91_p0 }
   0xa   :  { %101 = shalt.err (!%p98_p4)
}
   0xb   :  { %s127_s9 = smov 128   ;;  %s128_s10 = smov 8  }
   0xc   :  { %19 = dma.hbm_to_vmem [thread:$0]  %s146_s0, 256, %s14_s7, [#allocation3], %s127_s9, %s127_s9, %s128_s10  }
   0xd   :  { %122 = dma.done.wait [#allocation3], 256  }
   0xe   :  { %123 = vsyncadd [#allocation3], 4294967040  ;;  %vm31_vm0 = vcmask 1043456   ;;  %v23_v0 = vld [vmem:[#allocation2] sm:$0xff]  ;;  %v24_v1 = vld [vmem:[#allocation2 + $0x8] sm:$0xff]  ;;  %v46_v10 = vlaneseq  ;;  %s129_s0 = smov [#allocation5]  }
   0xf   :  { %v27_v2 = vcombine.high %v23_v0, %v23_v0  ;;  %v32_v3 = vsel %vm31_vm0, %v23_v0, 0.0  ;;  %v28_v4 = vcombine.high %v24_v1, %v24_v1  ;;  %v37_v6 = vsel %vm31_vm0, %v24_v1, 0.0  ;;  %s67_s13 = sshll.u32 %s129_s0, 4  ;;  %s68_s13 = int_to_ptr.vmem [resolvable:$true] %s67_s13 }
  0x10   :  { %v47_v11 = vand.u32 127, %v46_v10  ;;  %v49_v12 = vshrl.u32 %v46_v10, 7  ;;  %vm56_vm1 = vcmask 1041409   ;;  %vm59_vm2 = vcmask 25600   ;;  %s102_s14 = scalar_lea.vmem %s68_s13, 32  ;;  %p107_p6 = scmp.lt.s32.totalorder %s68_s13, %s68_s13 }
  0x11   :  { %v33_v5 = vsel %vm31_vm0, %v27_v2, 0.0  ;;  %v38_v7 = vsel %vm31_vm0, %v28_v4, 0.0  ;;  %p103_p5 = scmp.ne.s32.totalorder %s68_s13, %s102_s14  ;;  %p108_p7 = scmp.lt.s32.totalorder %s102_s14, %s102_s14 }
  0x12   :  { %v34_v8 = vadd.f32 %v33_v5, %v32_v3  ;;  %v39_v9 = vadd.f32 %v38_v7, %v37_v6  ;;  %v50_v14 = vsub.s32 %v47_v11, %v49_v12 }
  0x13   :  { %p109_p8 = por %p108_p7, %p107_p6 }
  0x14   :  { %35 = vadd.xlane.f32.xlu0 %v34_v8 }
  0x15   :  { %p110_p9 = pnand %p109_p8, %p103_p5 }
  0x18   :  { %40 = vadd.xlane.f32.xlu0 %v39_v9 }
  0x9d   :  { %v36_v13 = vpop.xlane.xlu0 %35 }
  0x9e   :  { %v42_v15 = vmul.f32 0.00390625, %v36_v13 }
  0xa0   :  { %v51_v18 = vrot.slane %v42_v15, %v50_v14 }
  0xa1   :  { %v41_v16 = vpop.xlane.xlu0 %40 }
  0xa2   :  { %v43_v17 = vmul.f32 0.00390625, %v41_v16 }
  0xa4   :  { %v55_v19 = vrot.slane %v43_v17, %v50_v14 }
  0xa6   :  { %v57_v20 = vsel %vm56_vm1, %v55_v19, %v51_v18 }
  0xa7   :  { %60 = vst.msk [vmem:[#allocation5] sm:$0x3] %vm59_vm2, %v57_v20 }
  0xa8   :  { %113 = shalt.err (!%p110_p9)
}
  0xa9   :  { %70 = dma.vmem_to_hbm [thread:$0]  %s68_s13, 32, %s147_s1, [#allocation4]  }
  0xaa   :  { %124 = dma.done.wait [#allocation4], 32  }
  0xab   :  { %125 = vsyncadd [#allocation4], 4294967264 }
  0xac   :  { %74 = vsyncpa [#allocation3], 1 }
  0xad   :  { %75 = vsyncpa [#allocation4], 1 }

</bundles_post_ra>
